<compile_context>
chip_gen: v7x
topology: tpu7x:2x2x1
jax: 0.10.0
libtpu: 0.0.40
codegen_flags: <defaults>
</compile_context>

<pallas_src>
import jax
import jax.numpy as jnp
from jax.experimental import pallas as pl
from jax.experimental.pallas import tpu as pltpu


def _round_up(x: int, m: int) -> int:
    return (x + m - 1) // m * m


def _choose_tile(n_pad: int) -> int:
    """Largest 128-multiple tile <= 512 that evenly divides n_pad."""
    for t in (512, 384, 256, 128):
        if t <= n_pad and n_pad % t == 0:
            return t
    return n_pad


# --------------------------------------------------------------------------- #
# Pallas kernel: one GNNLayer  out = relu( A @ (X @ W + b) )                  #
# --------------------------------------------------------------------------- #
def _gnn_layer_kernel(a_ref, x_ref, w_ref, b_ref, o_ref, acc_ref):
    k = pl.program_id(1)                       # src (reduction) tile index

    @pl.when(k == 0)
    def _():
        acc_ref[...] = jnp.zeros_like(acc_ref)

    # H_k = X[src_tile] @ W + b   (MXU, f32 accumulation; f32 bias epilogue).
    xw = jnp.dot(x_ref[...], w_ref[...], preferred_element_type=jnp.float32)
    xw = xw + b_ref[...]

    # aggr='add' message passing for this src tile: acc += A[dst,src] @ H_k.
    # (xw is re-cast to the matmul dtype for MXU rate; fine at test tolerance.)
    acc_ref[...] += jnp.dot(a_ref[...], xw.astype(a_ref.dtype),
                            preferred_element_type=jnp.float32)

    @pl.when(k == pl.num_programs(1) - 1)
    def _():
        # GNNLayer.update() relu.  The extra inter-layer F.relu is idempotent
        # and F.dropout(p=0.1, training=False) is the identity -> folded away.
        o_ref[...] = jnp.maximum(acc_ref[...], 0.0).astype(o_ref.dtype)


def _gnn_layer(adj_p, h_p, wt_p, b_p, out_dtype):
    """One layer: relu(A @ (H @ W + b)) on padded, pre-cast inputs."""
    n_pad = adj_p.shape[0]
    din, dout = wt_p.shape
    tm = _choose_tile(n_pad)                   # dst rows per tile
    tk = _choose_tile(n_pad)                   # src rows per tile (reduction)
    grid = (n_pad // tm, n_pad // tk)

    in_item = adj_p.dtype.itemsize
    out_item = jnp.dtype(out_dtype).itemsize

    # Derive the VMEM limit from the actual footprint:
    # double-buffered inputs + double-buffered output + f32 accumulator.
    footprint = (2 * ((tm * tk + tk * din + din * dout) * in_item + dout * 4)
                 + 2 * tm * dout * out_item
                 + tm * dout * 4)
    vmem_limit = int(min(max(footprint + (4 << 20), 32 << 20), 96 << 20))

    flops = grid[0] * 2 * n_pad * din * dout + 2 * n_pad * n_pad * dout
    bytes_accessed = (n_pad * n_pad * in_item            # A
                      + grid[0] * n_pad * din * in_item  # X (re-read per dst tile)
                      + din * dout * in_item + dout * 4  # W, b
                      + n_pad * dout * out_item)         # out

    return pl.pallas_call(
        _gnn_layer_kernel,
        out_shape=jax.ShapeDtypeStruct((n_pad, dout), out_dtype),
        grid=grid,
        in_specs=[
            pl.BlockSpec((tm, tk), lambda i, k: (i, k)),      # A[dst, src]
            pl.BlockSpec((tk, din), lambda i, k: (k, 0)),     # X[src, :]
            pl.BlockSpec((din, dout), lambda i, k: (0, 0)),   # W (resident)
            pl.BlockSpec((1, dout), lambda i, k: (0, 0)),     # b (resident)
        ],
        out_specs=pl.BlockSpec((tm, dout), lambda i, k: (i, 0)),
        scratch_shapes=[pltpu.VMEM((tm, dout), jnp.float32)],
        compiler_params=pltpu.CompilerParams(
            dimension_semantics=("parallel", "arbitrary"),
            vmem_limit_bytes=vmem_limit),
        cost_estimate=pl.CostEstimate(
            flops=flops, transcendentals=0, bytes_accessed=bytes_accessed),
    )(adj_p, h_p, wt_p, b_p)


# --------------------------------------------------------------------------- #
# Wrapper: one-time prepare (cacheable) + hot-path apply                      #
# --------------------------------------------------------------------------- #
def build_dense_adjacency(edge_index, num_nodes):
    """A[dst, src] = multiplicity of edge src->dst (PyG flow source_to_target)."""
    src = edge_index[0]
    dst = edge_index[1]
    adj = jnp.zeros((num_nodes, num_nodes), dtype=jnp.float32)
    adj = adj.at[dst, src].add(1.0)
    return adj


def init_linear_params(key, in_dim, out_dim):
    """nn.Linear.reset_parameters-style uniform(+-1/sqrt(in)) init."""
    kw, kb = jax.random.split(key)
    bound = 1.0 / jnp.sqrt(jnp.float32(in_dim))
    w = jax.random.uniform(kw, (out_dim, in_dim), jnp.float32, -bound, bound)
    b = jax.random.uniform(kb, (out_dim,), jnp.float32, -bound, bound)
    return w, b


def prepare_gnn(x, edge_index, params, *, matmul_dtype=jnp.bfloat16):
    """One-time layout plumbing: adjacency scatter, padding, transposes, casts.

    Call once per graph/parameter set and cache the result; the per-forward
    path (gnn_apply_padded) then only launches the Pallas layer kernels.
    NOTE: bf16 adjacency is exact only for edge multiplicities <= 256.
    """
    n, in_dim = x.shape
    n_pad = _round_up(n, 128)
    in_pad = _round_up(in_dim, 128)

    adj = build_dense_adjacency(edge_index, n)          # f32, exact counts
    adj_p = jnp.pad(adj.astype(matmul_dtype),
                    ((0, n_pad - n), (0, n_pad - n)))   # cast first, pad in bf16
    x_p = jnp.pad(x.astype(matmul_dtype),
                  ((0, n_pad - n), (0, in_pad - in_dim)))

    padded_params = []
    d_in = in_pad
    for (w, b) in params:
        out_dim, w_in = w.shape
        d_out = _round_up(out_dim, 128)
        wt = jnp.pad(w.T.astype(matmul_dtype),          # pre-transposed [in,out]
                     ((0, d_in - w_in), (0, d_out - out_dim)))
        b_p = jnp.pad(b.astype(jnp.float32),
                      (0, d_out - out_dim)).reshape(1, d_out)
        padded_params.append((wt, b_p))
        d_in = d_out

    return adj_p, x_p, tuple(padded_params)


def gnn_apply_padded(adj_p, x_p, padded_params):
    """Hot path: runs the fused per-layer Pallas kernels on padded inputs."""
    h = x_p
    num_layers = len(padded_params)
    for l, (wt, b_p) in enumerate(padded_params):
        out_dtype = jnp.float32 if l == num_layers - 1 else h.dtype
        h = _gnn_layer(adj_p, h, wt, b_p, out_dtype)
    return h                                            # padded f32


def gnn_forward(x, edge_index, params, *, matmul_dtype=jnp.bfloat16):
    """Convenience path: prepare + apply + slice (prefer caching prepare)."""
    n = x.shape[0]
    out_dim = params[-1][0].shape[0]
    adj_p, x_p, padded_params = prepare_gnn(
        x, edge_index, params, matmul_dtype=matmul_dtype)
    out_p = gnn_apply_padded(adj_p, x_p, padded_params)
    return out_p[:n, :out_dim]


def _reference_forward(x, edge_index, params):
    """Pure-JAX f32 reference (exact GNN.forward semantics, eval mode)."""
    n = x.shape[0]
    adj = build_dense_adjacency(edge_index, n)
    h = x
    for i, (w, b) in enumerate(params):
        h = jnp.maximum(adj @ (h @ w.T + b), 0.0)       # GNNLayer (+relu update)
        if i < len(params) - 1:
            h = jnp.maximum(h, 0.0)                     # F.relu (idempotent)
            # F.dropout(p=0.1, training=False) -> identity
    return h


if __name__ == "__main__":
    # Small synthetic graph: 16 nodes, input 8, hidden 32, output 16, 2 layers.
    num_nodes = 16
    input_dim = 8
    hidden_dim = 32
    output_dim = 16
    num_edges = 48

    key = jax.random.PRNGKey(0)
    kx, ke_src, ke_dst, kp1, kp2 = jax.random.split(key, 5)

    x = jax.random.normal(kx, (num_nodes, input_dim), jnp.float32)
    src = jax.random.randint(ke_src, (num_edges,), 0, num_nodes)
    dst = jax.random.randint(ke_dst, (num_edges,), 0, num_nodes)
    edge_index = jnp.stack([src, dst], axis=0)          # [2, E]

    params = [
        init_linear_params(kp1, input_dim, hidden_dim),
        init_linear_params(kp2, hidden_dim, output_dim),
    ]

    # One-time preparation (adjacency scatter + padding + casts): cache & reuse.
    adj_p, x_p, padded_params = prepare_gnn(x, edge_index, params)
    apply_fn = jax.jit(gnn_apply_padded)

    out_p = apply_fn(adj_p, x_p, padded_params)
    jax.block_until_ready(out_p)
    out = out_p[:num_nodes, :output_dim]
    assert out.shape == (num_nodes, output_dim)

    ref = _reference_forward(x, edge_index, params)
    assert jnp.allclose(out, ref, rtol=5e-2, atol=5e-2), "mismatch vs f32 reference"

    print("KERNEL_OK")
</pallas_src>

<mosaic_0001>
module attributes {stable_mosaic.version = 11 : i64} {
  func.func @_gnn_layer_kernel(%arg0: i32, %arg1: i32, %arg2: memref<128x128xbf16, #tpu.memory_space<vmem>>, %arg3: memref<128x128xbf16, #tpu.memory_space<vmem>>, %arg4: memref<128x128xbf16, #tpu.memory_space<vmem>>, %arg5: memref<1x128xf32, #tpu.memory_space<vmem>>, %arg6: memref<128x128xbf16, #tpu.memory_space<vmem>>, %arg7: memref<128x128xf32, #tpu.memory_space<vmem>>) attributes {dimension_semantics = [#tpu.dimension_semantics<parallel>, #tpu.dimension_semantics<arbitrary>], iteration_bounds = array<i64: 1, 1>, scalar_prefetch = 0 : i64, scratch_operands = 1 : i64, tpu.core_type = #tpu.core_type<tc>, window_params = [{transform_indices = @transform_0, window_bounds = array<i64: 128, 128>}, {transform_indices = @transform_1, window_bounds = array<i64: 128, 128>}, {pipeline_mode = #tpu.pipeline_mode<synchronous>, transform_indices = @transform_2, window_bounds = array<i64: 128, 128>}, {pipeline_mode = #tpu.pipeline_mode<synchronous>, transform_indices = @transform_3, window_bounds = array<i64: 1, 128>}, {transform_indices = @transform_4, window_bounds = array<i64: 128, 128>}]} {
    %c0_i32 = arith.constant 0 : i32
    %0 = arith.cmpi eq, %arg1, %c0_i32 : i32
    %1 = arith.extui %0 : i1 to i32
    %c0_i32_0 = arith.constant 0 : i32
    %2 = arith.cmpi ne, %1, %c0_i32_0 : i32
    scf.if %2 {
      %cst_15 = arith.constant 0.000000e+00 : f32
      %18 = vector.broadcast %cst_15 : f32 to vector<128x128xf32>
      %c0_16 = arith.constant 0 : index
      %c0_17 = arith.constant 0 : index
      %19 = vector.load %arg7[%c0_16, %c0_17] : memref<128x128xf32, #tpu.memory_space<vmem>>, vector<128x128xf32>
      tpu.vector_store %arg7[%c0_16, %c0_17], %18 {strides = array<i32>} : memref<128x128xf32, #tpu.memory_space<vmem>>, vector<128x128xf32>,
    } else {
    }
    %c0 = arith.constant 0 : index
    %c0_1 = arith.constant 0 : index
    %3 = vector.load %arg3[%c0, %c0_1] : memref<128x128xbf16, #tpu.memory_space<vmem>>, vector<128x128xbf16>
    %c0_2 = arith.constant 0 : index
    %c0_3 = arith.constant 0 : index
    %4 = vector.load %arg4[%c0_2, %c0_3] : memref<128x128xbf16, #tpu.memory_space<vmem>>, vector<128x128xbf16>
    %cst = arith.constant dense<0.000000e+00> : vector<128x128xf32>
    %5 = tpu.matmul %3, %4, %cst {dimension_numbers = #tpu.dot_dimension_numbers<[1], [0], [0], [1], [0, 0, 1, 1], [], []>} : vector<128x128xbf16>, vector<128x128xbf16>, vector<128x128xf32> -> vector<128x128xf32>
    %c0_4 = arith.constant 0 : index
    %c0_5 = arith.constant 0 : index
    %6 = vector.load %arg5[%c0_4, %c0_5] : memref<1x128xf32, #tpu.memory_space<vmem>>, vector<1x128xf32>
    %7 = vector.broadcast %6 : vector<1x128xf32> to vector<128x128xf32>
    %8 = arith.addf %5, %7 : vector<128x128xf32>
    %c0_6 = arith.constant 0 : index
    %c0_7 = arith.constant 0 : index
    %9 = vector.load %arg7[%c0_6, %c0_7] : memref<128x128xf32, #tpu.memory_space<vmem>>, vector<128x128xf32>
    %c0_8 = arith.constant 0 : index
    %c0_9 = arith.constant 0 : index
    %10 = vector.load %arg2[%c0_8, %c0_9] : memref<128x128xbf16, #tpu.memory_space<vmem>>, vector<128x128xbf16>
    %11 = arith.truncf %8 : vector<128x128xf32> to vector<128x128xbf16>
    %cst_10 = arith.constant dense<0.000000e+00> : vector<128x128xf32>
    %12 = tpu.matmul %10, %11, %cst_10 {dimension_numbers = #tpu.dot_dimension_numbers<[1], [0], [0], [1], [0, 0, 1, 1], [], []>} : vector<128x128xbf16>, vector<128x128xbf16>, vector<128x128xf32> -> vector<128x128xf32>
    %13 = arith.addf %9, %12 : vector<128x128xf32>
    %c0_11 = arith.constant 0 : index
    %c0_12 = arith.constant 0 : index
    %14 = vector.load %arg7[%c0_11, %c0_12] : memref<128x128xf32, #tpu.memory_space<vmem>>, vector<128x128xf32>
    tpu.vector_store %arg7[%c0_11, %c0_12], %13 {strides = array<i32>} : memref<128x128xf32, #tpu.memory_space<vmem>>, vector<128x128xf32>,
    %c0_i32_13 = arith.constant 0 : i32
    %15 = arith.cmpi eq, %arg1, %c0_i32_13 : i32
    %16 = arith.extui %15 : i1 to i32
    %c0_i32_14 = arith.constant 0 : i32
    %17 = arith.cmpi ne, %16, %c0_i32_14 : i32
    scf.if %17 {
      %c0_15 = arith.constant 0 : index
      %c0_16 = arith.constant 0 : index
      %18 = vector.load %arg7[%c0_15, %c0_16] : memref<128x128xf32, #tpu.memory_space<vmem>>, vector<128x128xf32>
      %cst_17 = arith.constant 0.000000e+00 : f32
      %19 = vector.broadcast %cst_17 : f32 to vector<128x128xf32>
      %20 = arith.maximumf %18, %19 : vector<128x128xf32>
      %21 = arith.truncf %20 : vector<128x128xf32> to vector<128x128xbf16>
      %c0_18 = arith.constant 0 : index
      %c0_19 = arith.constant 0 : index
      %22 = vector.load %arg6[%c0_18, %c0_19] : memref<128x128xbf16, #tpu.memory_space<vmem>>, vector<128x128xbf16>
      tpu.vector_store %arg6[%c0_18, %c0_19], %21 {strides = array<i32>} : memref<128x128xbf16, #tpu.memory_space<vmem>>, vector<128x128xbf16>,
    } else {
    }
    return
  }
  func.func @transform_0(%arg0: i32, %arg1: i32) -> (i32, i32) {
    %c0_i32 = arith.constant 0 : i32
    return %arg0, %arg1 : i32, i32
  }
  func.func @transform_1(%arg0: i32, %arg1: i32) -> (i32, i32) {
    %c0_i32 = arith.constant 0 : i32
    %c0_i32_0 = arith.constant 0 : i32
    return %arg1, %c0_i32 : i32, i32
  }
  func.func @transform_2(%arg0: i32, %arg1: i32) -> (i32, i32) {
    %c0_i32 = arith.constant 0 : i32
    %c0_i32_0 = arith.constant 0 : i32
    %c0_i32_1 = arith.constant 0 : i32
    return %c0_i32, %c0_i32_0 : i32, i32
  }
  func.func @transform_3(%arg0: i32, %arg1: i32) -> (i32, i32) {
    %c0_i32 = arith.constant 0 : i32
    %c0_i32_0 = arith.constant 0 : i32
    %c0_i32_1 = arith.constant 0 : i32
    return %c0_i32, %c0_i32_0 : i32, i32
  }
  func.func @transform_4(%arg0: i32, %arg1: i32) -> (i32, i32) {
    %c0_i32 = arith.constant 0 : i32
    %c0_i32_0 = arith.constant 0 : i32
    return %arg0, %c0_i32 : i32, i32
  }
}

module attributes {stable_mosaic.version = 11 : i64} {
  func.func @_gnn_layer_kernel(%arg0: i32, %arg1: i32, %arg2: memref<128x128xbf16, #tpu.memory_space<vmem>>, %arg3: memref<128x128xbf16, #tpu.memory_space<vmem>>, %arg4: memref<128x128xbf16, #tpu.memory_space<vmem>>, %arg5: memref<1x128xf32, #tpu.memory_space<vmem>>, %arg6: memref<128x128xf32, #tpu.memory_space<vmem>>, %arg7: memref<128x128xf32, #tpu.memory_space<vmem>>) attributes {dimension_semantics = [#tpu.dimension_semantics<parallel>, #tpu.dimension_semantics<arbitrary>], iteration_bounds = array<i64: 1, 1>, scalar_prefetch = 0 : i64, scratch_operands = 1 : i64, tpu.core_type = #tpu.core_type<tc>, window_params = [{transform_indices = @transform_0, window_bounds = array<i64: 128, 128>}, {transform_indices = @transform_1, window_bounds = array<i64: 128, 128>}, {pipeline_mode = #tpu.pipeline_mode<synchronous>, transform_indices = @transform_2, window_bounds = array<i64: 128, 128>}, {pipeline_mode = #tpu.pipeline_mode<synchronous>, transform_indices = @transform_3, window_bounds = array<i64: 1, 128>}, {transform_indices = @transform_4, window_bounds = array<i64: 128, 128>}]} {
    %c0_i32 = arith.constant 0 : i32
    %0 = arith.cmpi eq, %arg1, %c0_i32 : i32
    %1 = arith.extui %0 : i1 to i32
    %c0_i32_0 = arith.constant 0 : i32
    %2 = arith.cmpi ne, %1, %c0_i32_0 : i32
    scf.if %2 {
      %cst_15 = arith.constant 0.000000e+00 : f32
      %18 = vector.broadcast %cst_15 : f32 to vector<128x128xf32>
      %c0_16 = arith.constant 0 : index
      %c0_17 = arith.constant 0 : index
      %19 = vector.load %arg7[%c0_16, %c0_17] : memref<128x128xf32, #tpu.memory_space<vmem>>, vector<128x128xf32>
      tpu.vector_store %arg7[%c0_16, %c0_17], %18 {strides = array<i32>} : memref<128x128xf32, #tpu.memory_space<vmem>>, vector<128x128xf32>,
    } else {
    }
    %c0 = arith.constant 0 : index
    %c0_1 = arith.constant 0 : index
    %3 = vector.load %arg3[%c0, %c0_1] : memref<128x128xbf16, #tpu.memory_space<vmem>>, vector<128x128xbf16>
    %c0_2 = arith.constant 0 : index
    %c0_3 = arith.constant 0 : index
    %4 = vector.load %arg4[%c0_2, %c0_3] : memref<128x128xbf16, #tpu.memory_space<vmem>>, vector<128x128xbf16>
    %cst = arith.constant dense<0.000000e+00> : vector<128x128xf32>
    %5 = tpu.matmul %3, %4, %cst {dimension_numbers = #tpu.dot_dimension_numbers<[1], [0], [0], [1], [0, 0, 1, 1], [], []>} : vector<128x128xbf16>, vector<128x128xbf16>, vector<128x128xf32> -> vector<128x128xf32>
    %c0_4 = arith.constant 0 : index
    %c0_5 = arith.constant 0 : index
    %6 = vector.load %arg5[%c0_4, %c0_5] : memref<1x128xf32, #tpu.memory_space<vmem>>, vector<1x128xf32>
    %7 = vector.broadcast %6 : vector<1x128xf32> to vector<128x128xf32>
    %8 = arith.addf %5, %7 : vector<128x128xf32>
    %c0_6 = arith.constant 0 : index
    %c0_7 = arith.constant 0 : index
    %9 = vector.load %arg7[%c0_6, %c0_7] : memref<128x128xf32, #tpu.memory_space<vmem>>, vector<128x128xf32>
    %c0_8 = arith.constant 0 : index
    %c0_9 = arith.constant 0 : index
    %10 = vector.load %arg2[%c0_8, %c0_9] : memref<128x128xbf16, #tpu.memory_space<vmem>>, vector<128x128xbf16>
    %11 = arith.truncf %8 : vector<128x128xf32> to vector<128x128xbf16>
    %cst_10 = arith.constant dense<0.000000e+00> : vector<128x128xf32>
    %12 = tpu.matmul %10, %11, %cst_10 {dimension_numbers = #tpu.dot_dimension_numbers<[1], [0], [0], [1], [0, 0, 1, 1], [], []>} : vector<128x128xbf16>, vector<128x128xbf16>, vector<128x128xf32> -> vector<128x128xf32>
    %13 = arith.addf %9, %12 : vector<128x128xf32>
    %c0_11 = arith.constant 0 : index
    %c0_12 = arith.constant 0 : index
    %14 = vector.load %arg7[%c0_11, %c0_12] : memref<128x128xf32, #tpu.memory_space<vmem>>, vector<128x128xf32>
    tpu.vector_store %arg7[%c0_11, %c0_12], %13 {strides = array<i32>} : memref<128x128xf32, #tpu.memory_space<vmem>>, vector<128x128xf32>,
    %c0_i32_13 = arith.constant 0 : i32
    %15 = arith.cmpi eq, %arg1, %c0_i32_13 : i32
    %16 = arith.extui %15 : i1 to i32
    %c0_i32_14 = arith.constant 0 : i32
    %17 = arith.cmpi ne, %16, %c0_i32_14 : i32
    scf.if %17 {
      %c0_15 = arith.constant 0 : index
      %c0_16 = arith.constant 0 : index
      %18 = vector.load %arg7[%c0_15, %c0_16] : memref<128x128xf32, #tpu.memory_space<vmem>>, vector<128x128xf32>
      %cst_17 = arith.constant 0.000000e+00 : f32
      %19 = vector.broadcast %cst_17 : f32 to vector<128x128xf32>
      %20 = arith.maximumf %18, %19 : vector<128x128xf32>
      %c0_18 = arith.constant 0 : index
      %c0_19 = arith.constant 0 : index
      %21 = vector.load %arg6[%c0_18, %c0_19] : memref<128x128xf32, #tpu.memory_space<vmem>>, vector<128x128xf32>
      tpu.vector_store %arg6[%c0_18, %c0_19], %20 {strides = array<i32>} : memref<128x128xf32, #tpu.memory_space<vmem>>, vector<128x128xf32>,
    } else {
    }
    return
  }
  func.func @transform_0(%arg0: i32, %arg1: i32) -> (i32, i32) {
    %c0_i32 = arith.constant 0 : i32
    return %arg0, %arg1 : i32, i32
  }
  func.func @transform_1(%arg0: i32, %arg1: i32) -> (i32, i32) {
    %c0_i32 = arith.constant 0 : i32
    %c0_i32_0 = arith.constant 0 : i32
    return %arg1, %c0_i32 : i32, i32
  }
  func.func @transform_2(%arg0: i32, %arg1: i32) -> (i32, i32) {
    %c0_i32 = arith.constant 0 : i32
    %c0_i32_0 = arith.constant 0 : i32
    %c0_i32_1 = arith.constant 0 : i32
    return %c0_i32, %c0_i32_0 : i32, i32
  }
  func.func @transform_3(%arg0: i32, %arg1: i32) -> (i32, i32) {
    %c0_i32 = arith.constant 0 : i32
    %c0_i32_0 = arith.constant 0 : i32
    %c0_i32_1 = arith.constant 0 : i32
    return %c0_i32, %c0_i32_0 : i32, i32
  }
  func.func @transform_4(%arg0: i32, %arg1: i32) -> (i32, i32) {
    %c0_i32 = arith.constant 0 : i32
    %c0_i32_0 = arith.constant 0 : i32
    return %arg0, %c0_i32 : i32, i32
  }
}

</mosaic_0001>

<bundles_post_ra>
// kernel: gnn_apply_padded.2
= control target key start
LH: loop header
LB: loop body
LE: loop exit
PB: predicated region body
PF: predicated region fallthrough
CT: control target
= control target key end

     0   :  { %9 = vsyncpa [#allocation4], 0  ;;  %s1057_s0 = inlined_call_operand.hbm [shape: bf16[128,128], index: 0, kind: input, shape index: {}]   ;;  %s1058_s1 = inlined_call_operand.hbm [shape: bf16[128,128], index: 1, kind: input, shape index: {}]   ;;  %s1059_s2 = inlined_call_operand.hbm [shape: bf16[128,128], index: 2, kind: input, shape index: {}]   ;;  %s1060_s3 = inlined_call_operand.vmem [shape: f32[1,128], index: 3, kind: input, shape index: {}]   ;;  %s1061_s4 = inlined_call_operand.vmem [shape: bf16[128,128], index: 4, kind: output, shape index: {}]  }
   0x1   :  { %10 = vsyncpa [#allocation6], 0  ;;  %s948_s15 = smov [#allocation5]   ;;  %s949_s17 = smov [#allocation3]  }
   0x2   :  { %s28_s16 = sshll.u32 %s948_s15, 4  ;;  %s16_s18 = sshll.u32 %s949_s17, 4  ;;  %s29_s16 = int_to_ptr.vmem [resolvable:$true] %s28_s16  ;;  %s978_s18 = int_to_ptr.vmem [resolvable:$true] %s16_s18 }
   0x3   :  { %s878_s21 = scalar_lea.hbm %s1058_s1, 1024 }
   0x4   :  { %p879_p0 = scmp.ne.s32.totalorder %s1058_s1, %s878_s21  ;;  %p882_p1 = scmp.lt.u32.totalorder %s878_s21, %s1058_s1 }
   0x6   :  { %p884_p2 = pnand %p882_p1, %p879_p0 }
   0x8   :  { %887 = shalt.err (!%p884_p2)
}
   0x9   :  { %s888_s26 = scalar_lea.vmem %s29_s16, 1024  ;;  %p893_p4 = scmp.lt.s32.totalorder %s29_s16, %s29_s16 }
   0xa   :  { %p889_p3 = scmp.ne.s32.totalorder %s29_s16, %s888_s26  ;;  %p894_p5 = scmp.lt.s32.totalorder %s888_s26, %s888_s26 }
   0xc   :  { %p895_p6 = por %p894_p5, %p893_p4 }
   0xe   :  { %p896_p7 = pnand %p895_p6, %p889_p3 }
  0x10   :  { %899 = shalt.err (!%p896_p7)
}
  0x11   :  { %s950_s27 = smov 64   ;;  %s951_s28 = smov 4  }
  0x12   :  { %34 = dma.hbm_to_vmem [thread:$0]  %s1058_s1, 1024, %s29_s16, [#allocation6], %s950_s27, %s950_s27, %s951_s28  }
  0x13   :  { %s900_s7 = scalar_lea.hbm %s1057_s0, 1024 }
  0x14   :  { %p901_p8 = scmp.ne.s32.totalorder %s1057_s0, %s900_s7  ;;  %p904_p9 = scmp.lt.u32.totalorder %s900_s7, %s1057_s0 }
  0x16   :  { %p906_p10 = pnand %p904_p9, %p901_p8 }
  0x18   :  { %909 = shalt.err (!%p906_p10)
}
  0x19   :  { %s910_s12 = scalar_lea.vmem %s978_s18, 1024  ;;  %p915_p12 = scmp.lt.s32.totalorder %s978_s18, %s978_s18 }
  0x1a   :  { %p911_p11 = scmp.ne.s32.totalorder %s978_s18, %s910_s12  ;;  %p916_p13 = scmp.lt.s32.totalorder %s910_s12, %s910_s12 }
  0x1c   :  { %p917_p0 = por %p916_p13, %p915_p12 }
  0x1e   :  { %p918_p1 = pnand %p917_p0, %p911_p11 }
  0x20   :  { %921 = shalt.err (!%p918_p1)
}
  0x21   :  { %22 = dma.hbm_to_vmem [thread:$0]  %s1057_s0, 1024, %s978_s18, [#allocation4], %s950_s27, %s950_s27, %s951_s28  }
  0x22   :  { %s952_s14 = smov [#allocation7]   ;;  %s922_s19 = scalar_lea.hbm %s1059_s2, 1024 }
  0x23   :  { %s40_s15 = sshll.u32 %s952_s14, 4  ;;  %p923_p2 = scmp.ne.s32.totalorder %s1059_s2, %s922_s19  ;;  %s41_s15 = int_to_ptr.vmem [resolvable:$true] %s40_s15 }
  0x24   :  { %p926_p3 = scmp.lt.u32.totalorder %s922_s19, %s1059_s2 }
  0x26   :  { %p928_p4 = pnand %p926_p3, %p923_p2 }
  0x28   :  { %931 = shalt.err (!%p928_p4)
}
  0x29   :  { %s932_s24 = scalar_lea.vmem %s41_s15, 1024  ;;  %p937_p6 = scmp.lt.s32.totalorder %s41_s15, %s41_s15 }
  0x2a   :  { %p933_p5 = scmp.ne.s32.totalorder %s41_s15, %s932_s24  ;;  %p938_p7 = scmp.lt.s32.totalorder %s932_s24, %s932_s24 }
  0x2c   :  { %p939_p8 = por %p938_p7, %p937_p6 }
  0x2e   :  { %p940_p9 = pnand %p939_p8, %p933_p5 }
  0x30   :  { %943 = shalt.err (!%p940_p9)
}
  0x31   :  { %46 = dma.hbm_to_vmem [thread:$0]  %s1059_s2, 1024, %s41_s15, [#allocation6], %s950_s27, %s950_s27, %s951_s28  }
  0x32   :  { %944 = dma.done.wait [#allocation4], 1024  }
  0x33   :  { %945 = vsyncadd [#allocation4], 4294966272 }
  0x34   :  { %946 = dma.done.wait [#allocation6], 2048  }
  0x35   :  { %947 = vsyncadd [#allocation6], 4294965248  ;;  %v854_v0 = vld [vmem:[#allocation7] sm:$0xff]   ;;  %v855_v1 = vld [vmem:[#allocation7 + $0x8] sm:$0xff]  }
  0x36   :  { %785 = vmatprep.subr.bf16.mxu0 %v854_v0  ;;  %v856_v2 = vld [vmem:[#allocation7 + $0x10] sm:$0xff]   ;;  %v857_v3 = vld [vmem:[#allocation7 + $0x18] sm:$0xff]   ;;  %v862_v4 = vld [vmem:[#allocation5] sm:$0xff]  }
  0x37   :  { %786 = vmatpush3.bf16.msra.mxu0 %v854_v0  ;;  %801 = vmatprep.mubr.bf16.mxu0 %v862_v4  ;;  %v858_v5 = vld [vmem:[#allocation7 + $0x20] sm:$0xff]   ;;  %v859_v6 = vld [vmem:[#allocation7 + $0x28] sm:$0xff]   ;;  %v860_v7 = vld [vmem:[#allocation7 + $0x30] sm:$0xff]  }
  0x38   :  { %787 = vmatprep.subr.bf16.mxu0 %v855_v1  ;;  %v861_v8 = vld [vmem:[#allocation7 + $0x38] sm:$0xff]   ;;  %v863_v9 = vld [vmem:[#allocation5 + $0x8] sm:$0xff]   ;;  %v864_v10 = vld [vmem:[#allocation5 + $0x10] sm:$0xff]  }
  0x39   :  { %v865_v11 = vld [vmem:[#allocation5 + $0x18] sm:$0xff]   ;;  %v866_v12 = vld [vmem:[#allocation5 + $0x20] sm:$0xff]   ;;  %v867_v13 = vld [vmem:[#allocation5 + $0x28] sm:$0xff]  }
  0x3a   :  { %v868_v14 = vld [vmem:[#allocation5 + $0x30] sm:$0xff]   ;;  %v869_v15 = vld [vmem:[#allocation5 + $0x38] sm:$0xff]   ;;  %v870_v16 = vld [vmem:[#allocation3] sm:$0xff]  }
  0x3b   :  { %788 = vmatpush3.bf16.msra.mxu0 %v855_v1  ;;  %833 = vmatprep.mubr.bf16.mxu1 %v870_v16  ;;  %v649_v18 = vld [vmem:[%s1060_s3] ss:$0 sm:$0xff]  ;;  %v871_v58 = vld [vmem:[#allocation3 + $0x8] sm:$0xff]   ;;  %v872_v59 = vld [vmem:[#allocation3 + $0x10] sm:$0xff]  }
  0x3c   :  { %789 = vmatprep.subr.bf16.mxu0 %v856_v2  ;;  %v873_v60 = vld [vmem:[#allocation3 + $0x18] sm:$0xff]   ;;  %v874_v61 = vld [vmem:[#allocation3 + $0x20] sm:$0xff]   ;;  %v875_v62 = vld [vmem:[#allocation3 + $0x28] sm:$0xff]  }
  0x3d   :  { %v876_v63 = vld [vmem:[#allocation3 + $0x30] sm:$0xff]   ;;  %v877_v0 = vld [vmem:[#allocation3 + $0x38] sm:$0xff]  }
  0x3f   :  { %790 = vmatpush3.bf16.msra.mxu0 %v856_v2 }
  0x40   :  { %791 = vmatprep.subr.bf16.mxu0 %v857_v3 }
  0x43   :  { %792 = vmatpush3.bf16.msra.mxu0 %v857_v3 }
  0x44   :  { %793 = vmatprep.subr.bf16.mxu0 %v858_v5 }
  0x47   :  { %794 = vmatpush3.bf16.msra.mxu0 %v858_v5 }
  0x48   :  { %795 = vmatprep.subr.bf16.mxu0 %v859_v6 }
  0x4b   :  { %796 = vmatpush3.bf16.msra.mxu0 %v859_v6 }
  0x4c   :  { %797 = vmatprep.subr.bf16.mxu0 %v860_v7 }
  0x4f   :  { %798 = vmatpush3.bf16.msra.mxu0 %v860_v7 }
  0x50   :  { %799 = vmatprep.subr.bf16.mxu0 %v861_v8 }
  0x53   :  { %800 = vmatpush3.bf16.msra.mxu0 %v861_v8 }
  0x56   :  { %802 = vmatmul.mubr.bf16.vlgmr.msra.gmra.mrb[0].mxu0 %v863_v9 }
  0x57   :  { %805 = vmatprep.mubr.bf16.mxu0 %v864_v10 }
  0x5e   :  { %806 = vmatmul.mubr.bf16.gmra.mrb[4].mxu0 %v865_v11 }
  0x5f   :  { %809 = vmatprep.mubr.bf16.mxu0 %v866_v12 }
  0x66   :  { %810 = vmatmul.mubr.bf16.gmra.mrb[8].mxu0 %v867_v13 }
  0x67   :  { %813 = vmatprep.mubr.bf16.mxu0 %v868_v14 }
  0x6e   :  { %814 = vmatmul.mubr.bf16.gmra.mrb[12].mxu0 %v869_v15 }
 0x129   :  { %v803_v17 = vpop.f32.mrb[0].mxu0 }
 0x12a   :  { %v248_v19 = vpop.f32.mrb[1].mxu0  ;;  %v257_v21 = vadd.f32 %v803_v17, %v649_v18 }
 0x12b   :  { %v804_v20 = vpop.f32.mrb[2].mxu0  ;;  %v249_v24 = vadd.f32 %v649_v18, %v248_v19 }
 0x12c   :  { %v260_v22 = vadd.f32 %v804_v20, %v649_v18  ;;  %v251_v23 = vpop.f32.mrb[3].mxu0 }
 0x12d   :  { %v252_v25 = vadd.f32 %v649_v18, %v251_v23 }
 0x12e   :  { %v344_v26 = vpack.c.bf16 %v260_v22, %v257_v21 }
 0x12f   :  { %v343_v27 = vpack.c.bf16 %v252_v25, %v249_v24 }
 0x131   :  { %v807_v28 = vpop.f32.mrb[4].mxu0  ;;  %817 = vmatprep.subr.bf16.mxu1 %v343_v27 }
 0x132   :  { %v264_v29 = vpop.f32.mrb[5].mxu0  ;;  %818 = vmatpush3.bf16.msra.mxu1 %v343_v27  ;;  %v273_v31 = vadd.f32 %v807_v28, %v649_v18 }
 0x133   :  { %v808_v30 = vpop.f32.mrb[6].mxu0  ;;  %819 = vmatprep.subr.bf16.mxu1 %v344_v26  ;;  %v265_v34 = vadd.f32 %v649_v18, %v264_v29 }
 0x134   :  { %v276_v32 = vadd.f32 %v808_v30, %v649_v18  ;;  %v267_v33 = vpop.f32.mrb[7].mxu0 }
 0x135   :  { %v268_v35 = vadd.f32 %v649_v18, %v267_v33 }
 0x136   :  { %v346_v36 = vpack.c.bf16 %v276_v32, %v273_v31  ;;  %820 = vmatpush3.bf16.msra.mxu1 %v344_v26 }
 0x137   :  { %v345_v37 = vpack.c.bf16 %v268_v35, %v265_v34 }
 0x139   :  { %v811_v38 = vpop.f32.mrb[8].mxu0  ;;  %821 = vmatprep.subr.bf16.mxu1 %v345_v37 }
 0x13a   :  { %v280_v39 = vpop.f32.mrb[9].mxu0  ;;  %822 = vmatpush3.bf16.msra.mxu1 %v345_v37  ;;  %v289_v41 = vadd.f32 %v811_v38, %v649_v18 }
 0x13b   :  { %v812_v40 = vpop.f32.mrb[10].mxu0  ;;  %823 = vmatprep.subr.bf16.mxu1 %v346_v36  ;;  %v281_v44 = vadd.f32 %v649_v18, %v280_v39 }
 0x13c   :  { %v292_v42 = vadd.f32 %v812_v40, %v649_v18  ;;  %v283_v43 = vpop.f32.mrb[11].mxu0 }
 0x13d   :  { %v284_v45 = vadd.f32 %v649_v18, %v283_v43 }
 0x13e   :  { %v348_v46 = vpack.c.bf16 %v292_v42, %v289_v41  ;;  %824 = vmatpush3.bf16.msra.mxu1 %v346_v36 }
 0x13f   :  { %v347_v47 = vpack.c.bf16 %v284_v45, %v281_v44 }
 0x141   :  { %v815_v48 = vpop.f32.mrb[12].mxu0  ;;  %825 = vmatprep.subr.bf16.mxu1 %v347_v47 }
 0x142   :  { %v296_v49 = vpop.f32.mrb[13].mxu0  ;;  %826 = vmatpush3.bf16.msra.mxu1 %v347_v47  ;;  %v305_v51 = vadd.f32 %v815_v48, %v649_v18 }
 0x143   :  { %v816_v50 = vpop.f32.mrb[14].mxu0  ;;  %827 = vmatprep.subr.bf16.mxu1 %v348_v46  ;;  %v297_v54 = vadd.f32 %v649_v18, %v296_v49 }
 0x144   :  { %v308_v52 = vadd.f32 %v816_v50, %v649_v18  ;;  %v299_v53 = vpop.f32.mrb[15].mxu0 }
 0x145   :  { %v300_v55 = vadd.f32 %v649_v18, %v299_v53 }
 0x146   :  { %v350_v56 = vpack.c.bf16 %v308_v52, %v305_v51  ;;  %828 = vmatpush3.bf16.msra.mxu1 %v348_v46 }
 0x147   :  { %v349_v57 = vpack.c.bf16 %v300_v55, %v297_v54 }
 0x149   :  { %829 = vmatprep.subr.bf16.mxu1 %v349_v57 }
 0x14a   :  { %830 = vmatpush3.bf16.msra.mxu1 %v349_v57 }
 0x14b   :  { %831 = vmatprep.subr.bf16.mxu1 %v350_v56 }
 0x14e   :  { %832 = vmatpush3.bf16.msra.mxu1 %v350_v56 }
 0x151   :  { %834 = vmatmul.mubr.bf16.vlgmr.msra.gmra.mrb[0].mxu1 %v871_v58 }
 0x152   :  { %837 = vmatprep.mubr.bf16.mxu1 %v872_v59 }
 0x159   :  { %838 = vmatmul.mubr.bf16.gmra.mrb[4].mxu1 %v873_v60 }
 0x15a   :  { %841 = vmatprep.mubr.bf16.mxu1 %v874_v61 }
 0x161   :  { %842 = vmatmul.mubr.bf16.gmra.mrb[8].mxu1 %v875_v62 }
 0x162   :  { %845 = vmatprep.mubr.bf16.mxu1 %v876_v63 }
 0x169   :  { %846 = vmatmul.mubr.bf16.gmra.mrb[12].mxu1 %v877_v0 }
 0x224   :  { %v835_v1 = vpop.f32.mrb[0].mxu1 }
 0x225   :  { %v433_v2 = vpop.f32.mrb[1].mxu1  ;;  %v549_v4 = vmax.f32 %v835_v1, 0.0 }
 0x226   :  { %v836_v3 = vpop.f32.mrb[2].mxu1  ;;  %v547_v7 = vmax.f32 %v433_v2, 0.0 }
 0x227   :  { %v550_v5 = vmax.f32 %v836_v3, 0.0  ;;  %v436_v6 = vpop.f32.mrb[3].mxu1 }
 0x228   :  { %v548_v8 = vmax.f32 %v436_v6, 0.0 }
 0x229   :  { %v714_v9 = vpack.c.bf16 %v550_v5, %v549_v4 }
 0x22a   :  { %v709_v10 = vpack.c.bf16 %v548_v8, %v547_v7 }
 0x22b   :  { %746 = vst [vmem:[%s1061_s4 + $0x8] sm:$0xff] %v714_v9  }
 0x22c   :  { %710 = vst [vmem:[%s1061_s4] sm:$0xff] %v709_v10   ;;  %v839_v11 = vpop.f32.mrb[4].mxu1 }
 0x22d   :  { %v449_v12 = vpop.f32.mrb[5].mxu1  ;;  %v553_v14 = vmax.f32 %v839_v11, 0.0 }
 0x22e   :  { %v840_v13 = vpop.f32.mrb[6].mxu1  ;;  %v551_v17 = vmax.f32 %v449_v12, 0.0 }
 0x22f   :  { %v554_v15 = vmax.f32 %v840_v13, 0.0  ;;  %v452_v16 = vpop.f32.mrb[7].mxu1 }
 0x230   :  { %v552_v18 = vmax.f32 %v452_v16, 0.0 }
 0x231   :  { %v724_v19 = vpack.c.bf16 %v554_v15, %v553_v14 }
 0x232   :  { %v719_v20 = vpack.c.bf16 %v552_v18, %v551_v17 }
 0x233   :  { %748 = vst [vmem:[%s1061_s4 + $0x18] sm:$0xff] %v724_v19  }
 0x234   :  { %747 = vst [vmem:[%s1061_s4 + $0x10] sm:$0xff] %v719_v20   ;;  %v843_v21 = vpop.f32.mrb[8].mxu1 }
 0x235   :  { %v465_v22 = vpop.f32.mrb[9].mxu1  ;;  %v557_v24 = vmax.f32 %v843_v21, 0.0 }
 0x236   :  { %v844_v23 = vpop.f32.mrb[10].mxu1  ;;  %v555_v27 = vmax.f32 %v465_v22, 0.0 }
 0x237   :  { %v558_v25 = vmax.f32 %v844_v23, 0.0  ;;  %v468_v26 = vpop.f32.mrb[11].mxu1 }
 0x238   :  { %v556_v28 = vmax.f32 %v468_v26, 0.0 }
 0x239   :  { %v734_v29 = vpack.c.bf16 %v558_v25, %v557_v24 }
 0x23a   :  { %v729_v30 = vpack.c.bf16 %v556_v28, %v555_v27 }
 0x23b   :  { %750 = vst [vmem:[%s1061_s4 + $0x28] sm:$0xff] %v734_v29  }
 0x23c   :  { %749 = vst [vmem:[%s1061_s4 + $0x20] sm:$0xff] %v729_v30   ;;  %v847_v31 = vpop.f32.mrb[12].mxu1 }
 0x23d   :  { %v481_v32 = vpop.f32.mrb[13].mxu1  ;;  %v561_v34 = vmax.f32 %v847_v31, 0.0 }
 0x23e   :  { %v848_v33 = vpop.f32.mrb[14].mxu1  ;;  %v559_v37 = vmax.f32 %v481_v32, 0.0 }
 0x23f   :  { %v562_v35 = vmax.f32 %v848_v33, 0.0  ;;  %v484_v36 = vpop.f32.mrb[15].mxu1 }
 0x240   :  { %v560_v38 = vmax.f32 %v484_v36, 0.0 }
 0x241   :  { %v744_v39 = vpack.c.bf16 %v562_v35, %v561_v34 }
 0x242   :  { %v739_v40 = vpack.c.bf16 %v560_v38, %v559_v37 }
 0x243   :  { %752 = vst [vmem:[%s1061_s4 + $0x38] sm:$0xff] %v744_v39  }
 0x244   :  { %751 = vst [vmem:[%s1061_s4 + $0x30] sm:$0xff] %v739_v40  }
 0x245   :  { %647 = vsyncpa [#allocation4], 1 }
 0x246   :  { %648 = vsyncpa [#allocation6], 1 }

// kernel: gnn_apply_padded.3
= control target key start
LH: loop header
LB: loop body
LE: loop exit
PB: predicated region body
PF: predicated region fallthrough
CT: control target
= control target key end

     0   :  { %s842_s0 = inlined_call_operand.vmem [shape: bf16[128,128], index: 0, kind: input, shape index: {}]   ;;  %s843_s1 = inlined_call_operand.vmem [shape: bf16[128,128], index: 1, kind: input, shape index: {}]   ;;  %s844_s2 = inlined_call_operand.vmem [shape: bf16[128,128], index: 2, kind: input, shape index: {}]   ;;  %s845_s3 = inlined_call_operand.vmem [shape: f32[1,128], index: 3, kind: input, shape index: {}]   ;;  %s846_s4 = inlined_call_operand.hbm [shape: f32[128,128], index: 4, kind: output, shape index: {}]  }
   0x1   :  { %v679_v0 = vld [vmem:[%s844_s2] sm:$0xff]   ;;  %v680_v1 = vld [vmem:[%s844_s2 + $0x8] sm:$0xff]   ;;  %v681_v2 = vld [vmem:[%s844_s2 + $0x10] sm:$0xff]  }
   0x2   :  { %612 = vmatprep.subr.bf16.mxu0 %v679_v0  ;;  %v682_v3 = vld [vmem:[%s844_s2 + $0x18] sm:$0xff]   ;;  %v687_v4 = vld [vmem:[%s843_s1] sm:$0xff]   ;;  %v684_v6 = vld [vmem:[%s844_s2 + $0x28] sm:$0xff]  }
   0x3   :  { %613 = vmatpush3.bf16.msra.mxu0 %v679_v0  ;;  %628 = vmatprep.mubr.bf16.mxu0 %v687_v4  ;;  %v683_v5 = vld [vmem:[%s844_s2 + $0x20] sm:$0xff]   ;;  %v685_v7 = vld [vmem:[%s844_s2 + $0x30] sm:$0xff]  }
   0x4   :  { %614 = vmatprep.subr.bf16.mxu0 %v680_v1 }
   0x7   :  { %615 = vmatpush3.bf16.msra.mxu0 %v680_v1 }
   0x8   :  { %616 = vmatprep.subr.bf16.mxu0 %v681_v2 }
   0xb   :  { %617 = vmatpush3.bf16.msra.mxu0 %v681_v2 }
   0xc   :  { %618 = vmatprep.subr.bf16.mxu0 %v682_v3 }
   0xf   :  { %619 = vmatpush3.bf16.msra.mxu0 %v682_v3 }
  0x10   :  { %620 = vmatprep.subr.bf16.mxu0 %v683_v5 }
  0x13   :  { %621 = vmatpush3.bf16.msra.mxu0 %v683_v5 }
  0x14   :  { %622 = vmatprep.subr.bf16.mxu0 %v684_v6 }
  0x15   :  { %9 = vsyncpa [#allocation4], 0  ;;  %v686_v8 = vld [vmem:[%s844_s2 + $0x38] sm:$0xff]   ;;  %v688_v9 = vld [vmem:[%s843_s1 + $0x8] sm:$0xff]  }
  0x16   :  { %v689_v10 = vld [vmem:[%s843_s1 + $0x10] sm:$0xff]   ;;  %v690_v11 = vld [vmem:[%s843_s1 + $0x18] sm:$0xff]   ;;  %v691_v12 = vld [vmem:[%s843_s1 + $0x20] sm:$0xff]  }
  0x17   :  { %623 = vmatpush3.bf16.msra.mxu0 %v684_v6  ;;  %v692_v13 = vld [vmem:[%s843_s1 + $0x28] sm:$0xff]   ;;  %v693_v14 = vld [vmem:[%s843_s1 + $0x30] sm:$0xff]   ;;  %v694_v15 = vld [vmem:[%s843_s1 + $0x38] sm:$0xff]  }
  0x18   :  { %624 = vmatprep.subr.bf16.mxu0 %v685_v7  ;;  %v695_v16 = vld [vmem:[%s842_s0] sm:$0xff]   ;;  %v696_v58 = vld [vmem:[%s842_s0 + $0x8] sm:$0xff]   ;;  %v697_v59 = vld [vmem:[%s842_s0 + $0x10] sm:$0xff]  }
  0x19   :  { %660 = vmatprep.mubr.bf16.mxu1 %v695_v16  ;;  %v555_v18 = vld [vmem:[%s845_s3] ss:$0 sm:$0xff]  ;;  %v698_v60 = vld [vmem:[%s842_s0 + $0x18] sm:$0xff]   ;;  %v700_v62 = vld [vmem:[%s842_s0 + $0x28] sm:$0xff]  }
  0x1a   :  { %v699_v61 = vld [vmem:[%s842_s0 + $0x20] sm:$0xff]   ;;  %v701_v63 = vld [vmem:[%s842_s0 + $0x30] sm:$0xff]   ;;  %v702_v0 = vld [vmem:[%s842_s0 + $0x38] sm:$0xff]   ;;  %s727_s0 = smov [#allocation3]  }
  0x1b   :  { %625 = vmatpush3.bf16.msra.mxu0 %v685_v7  ;;  %s544_s10 = sshll.u32 %s727_s0, 4  ;;  %s545_s10 = int_to_ptr.vmem [resolvable:$true] %s544_s10 }
  0x1c   :  { %626 = vmatprep.subr.bf16.mxu0 %v686_v8  ;;  %s703_s11 = scalar_lea.vmem %s545_s10, 2048  ;;  %p708_p1 = scmp.lt.s32.totalorder %s545_s10, %s545_s10 }
  0x1d   :  { %p704_p0 = scmp.ne.s32.totalorder %s545_s10, %s703_s11  ;;  %p709_p2 = scmp.lt.s32.totalorder %s703_s11, %s703_s11 }
  0x1f   :  { %627 = vmatpush3.bf16.msra.mxu0 %v686_v8  ;;  %p710_p3 = por %p709_p2, %p708_p1 }
  0x21   :  { %p711_p4 = pnand %p710_p3, %p704_p0 }
  0x22   :  { %629 = vmatmul.mubr.bf16.vlgmr.msra.gmra.mrb[0].mxu0 %v688_v9 }
  0x23   :  { %632 = vmatprep.mubr.bf16.mxu0 %v689_v10 }
  0x2a   :  { %633 = vmatmul.mubr.bf16.gmra.mrb[4].mxu0 %v690_v11 }
  0x2b   :  { %636 = vmatprep.mubr.bf16.mxu0 %v691_v12 }
  0x32   :  { %637 = vmatmul.mubr.bf16.gmra.mrb[8].mxu0 %v692_v13 }
  0x33   :  { %640 = vmatprep.mubr.bf16.mxu0 %v693_v14 }
  0x3a   :  { %641 = vmatmul.mubr.bf16.gmra.mrb[12].mxu0 %v694_v15 }
  0xf5   :  { %v630_v17 = vpop.f32.mrb[0].mxu0 }
  0xf6   :  { %v208_v19 = vpop.f32.mrb[1].mxu0  ;;  %v217_v21 = vadd.f32 %v630_v17, %v555_v18 }
  0xf7   :  { %v631_v20 = vpop.f32.mrb[2].mxu0  ;;  %v209_v24 = vadd.f32 %v555_v18, %v208_v19 }
  0xf8   :  { %v220_v22 = vadd.f32 %v631_v20, %v555_v18  ;;  %v211_v23 = vpop.f32.mrb[3].mxu0 }
  0xf9   :  { %v212_v25 = vadd.f32 %v555_v18, %v211_v23 }
  0xfa   :  { %v304_v26 = vpack.c.bf16 %v220_v22, %v217_v21 }
  0xfb   :  { %v303_v27 = vpack.c.bf16 %v212_v25, %v209_v24 }
  0xfd   :  { %v634_v28 = vpop.f32.mrb[4].mxu0  ;;  %644 = vmatprep.subr.bf16.mxu1 %v303_v27 }
  0xfe   :  { %v224_v29 = vpop.f32.mrb[5].mxu0  ;;  %645 = vmatpush3.bf16.msra.mxu1 %v303_v27  ;;  %v233_v31 = vadd.f32 %v634_v28, %v555_v18 }
  0xff   :  { %v635_v30 = vpop.f32.mrb[6].mxu0  ;;  %646 = vmatprep.subr.bf16.mxu1 %v304_v26  ;;  %v225_v34 = vadd.f32 %v555_v18, %v224_v29 }
 0x100   :  { %v236_v32 = vadd.f32 %v635_v30, %v555_v18  ;;  %v227_v33 = vpop.f32.mrb[7].mxu0 }
 0x101   :  { %v228_v35 = vadd.f32 %v555_v18, %v227_v33 }
 0x102   :  { %v306_v36 = vpack.c.bf16 %v236_v32, %v233_v31  ;;  %647 = vmatpush3.bf16.msra.mxu1 %v304_v26 }
 0x103   :  { %v305_v37 = vpack.c.bf16 %v228_v35, %v225_v34 }
 0x105   :  { %v638_v38 = vpop.f32.mrb[8].mxu0  ;;  %648 = vmatprep.subr.bf16.mxu1 %v305_v37 }
 0x106   :  { %v240_v39 = vpop.f32.mrb[9].mxu0  ;;  %649 = vmatpush3.bf16.msra.mxu1 %v305_v37  ;;  %v249_v41 = vadd.f32 %v638_v38, %v555_v18 }
 0x107   :  { %v639_v40 = vpop.f32.mrb[10].mxu0  ;;  %650 = vmatprep.subr.bf16.mxu1 %v306_v36  ;;  %v241_v44 = vadd.f32 %v555_v18, %v240_v39 }
 0x108   :  { %v252_v42 = vadd.f32 %v639_v40, %v555_v18  ;;  %v243_v43 = vpop.f32.mrb[11].mxu0 }
 0x109   :  { %v244_v45 = vadd.f32 %v555_v18, %v243_v43 }
 0x10a   :  { %v308_v46 = vpack.c.bf16 %v252_v42, %v249_v41  ;;  %651 = vmatpush3.bf16.msra.mxu1 %v306_v36 }
 0x10b   :  { %v307_v47 = vpack.c.bf16 %v244_v45, %v241_v44 }
 0x10d   :  { %v642_v48 = vpop.f32.mrb[12].mxu0  ;;  %652 = vmatprep.subr.bf16.mxu1 %v307_v47 }
 0x10e   :  { %v256_v49 = vpop.f32.mrb[13].mxu0  ;;  %653 = vmatpush3.bf16.msra.mxu1 %v307_v47  ;;  %v265_v51 = vadd.f32 %v642_v48, %v555_v18 }
 0x10f   :  { %v643_v50 = vpop.f32.mrb[14].mxu0  ;;  %654 = vmatprep.subr.bf16.mxu1 %v308_v46  ;;  %v257_v54 = vadd.f32 %v555_v18, %v256_v49 }
 0x110   :  { %v268_v52 = vadd.f32 %v643_v50, %v555_v18  ;;  %v259_v53 = vpop.f32.mrb[15].mxu0 }
 0x111   :  { %v260_v55 = vadd.f32 %v555_v18, %v259_v53 }
 0x112   :  { %v310_v56 = vpack.c.bf16 %v268_v52, %v265_v51  ;;  %655 = vmatpush3.bf16.msra.mxu1 %v308_v46 }
 0x113   :  { %v309_v57 = vpack.c.bf16 %v260_v55, %v257_v54 }
 0x115   :  { %656 = vmatprep.subr.bf16.mxu1 %v309_v57 }
 0x116   :  { %657 = vmatpush3.bf16.msra.mxu1 %v309_v57 }
 0x117   :  { %658 = vmatprep.subr.bf16.mxu1 %v310_v56 }
 0x11a   :  { %659 = vmatpush3.bf16.msra.mxu1 %v310_v56 }
 0x11d   :  { %661 = vmatmul.mubr.bf16.vlgmr.msra.gmra.mrb[0].mxu1 %v696_v58 }
 0x11e   :  { %664 = vmatprep.mubr.bf16.mxu1 %v697_v59 }
 0x125   :  { %665 = vmatmul.mubr.bf16.gmra.mrb[4].mxu1 %v698_v60 }
 0x126   :  { %668 = vmatprep.mubr.bf16.mxu1 %v699_v61 }
 0x12d   :  { %669 = vmatmul.mubr.bf16.gmra.mrb[8].mxu1 %v700_v62 }
 0x12e   :  { %672 = vmatprep.mubr.bf16.mxu1 %v701_v63 }
 0x135   :  { %673 = vmatmul.mubr.bf16.gmra.mrb[12].mxu1 %v702_v0 }
 0x1f0   :  { %v662_v1 = vpop.f32.mrb[0].mxu1 }
 0x1f1   :  { %v509_v2 = vmax.f32 %v662_v1, 0.0  ;;  %v393_v3 = vpop.f32.mrb[1].mxu1 }
 0x1f2   :  { %v507_v4 = vmax.f32 %v393_v3, 0.0  ;;  %v663_v5 = vpop.f32.mrb[2].mxu1 }
 0x1f3   :  { %525 = vst [vmem:[#allocation3 + $0x10] sm:$0xff] %v509_v2  ;;  %v510_v6 = vmax.f32 %v663_v5, 0.0  ;;  %v396_v7 = vpop.f32.mrb[3].mxu1 }
 0x1f4   :  { %523 = vst [vmem:[#allocation3] sm:$0xff] %v507_v4  ;;  %v508_v8 = vmax.f32 %v396_v7, 0.0 }
 0x1f5   :  { %526 = vst [vmem:[#allocation3 + $0x18] sm:$0xff] %v510_v6 }
 0x1f6   :  { %524 = vst [vmem:[#allocation3 + $0x8] sm:$0xff] %v508_v8 }
 0x1f8   :  { %v666_v9 = vpop.f32.mrb[4].mxu1 }
 0x1f9   :  { %v513_v10 = vmax.f32 %v666_v9, 0.0  ;;  %v409_v11 = vpop.f32.mrb[5].mxu1 }
 0x1fa   :  { %v511_v12 = vmax.f32 %v409_v11, 0.0  ;;  %v667_v13 = vpop.f32.mrb[6].mxu1 }
 0x1fb   :  { %529 = vst [vmem:[#allocation3 + $0x30] sm:$0xff] %v513_v10  ;;  %v514_v14 = vmax.f32 %v667_v13, 0.0  ;;  %v412_v15 = vpop.f32.mrb[7].mxu1 }
 0x1fc   :  { %527 = vst [vmem:[#allocation3 + $0x20] sm:$0xff] %v511_v12  ;;  %v512_v16 = vmax.f32 %v412_v15, 0.0 }
 0x1fd   :  { %530 = vst [vmem:[#allocation3 + $0x38] sm:$0xff] %v514_v14 }
 0x1fe   :  { %528 = vst [vmem:[#allocation3 + $0x28] sm:$0xff] %v512_v16 }
 0x200   :  { %v670_v17 = vpop.f32.mrb[8].mxu1 }
 0x201   :  { %v517_v18 = vmax.f32 %v670_v17, 0.0  ;;  %v425_v19 = vpop.f32.mrb[9].mxu1 }
 0x202   :  { %v515_v20 = vmax.f32 %v425_v19, 0.0  ;;  %v671_v21 = vpop.f32.mrb[10].mxu1 }
 0x203   :  { %533 = vst [vmem:[#allocation3 + $0x50] sm:$0xff] %v517_v18  ;;  %v518_v22 = vmax.f32 %v671_v21, 0.0  ;;  %v428_v23 = vpop.f32.mrb[11].mxu1 }
 0x204   :  { %531 = vst [vmem:[#allocation3 + $0x40] sm:$0xff] %v515_v20  ;;  %v516_v24 = vmax.f32 %v428_v23, 0.0 }
 0x205   :  { %534 = vst [vmem:[#allocation3 + $0x58] sm:$0xff] %v518_v22 }
 0x206   :  { %532 = vst [vmem:[#allocation3 + $0x48] sm:$0xff] %v516_v24 }
 0x208   :  { %v674_v25 = vpop.f32.mrb[12].mxu1 }
 0x209   :  { %v521_v26 = vmax.f32 %v674_v25, 0.0  ;;  %v441_v27 = vpop.f32.mrb[13].mxu1 }
 0x20a   :  { %v519_v28 = vmax.f32 %v441_v27, 0.0  ;;  %v675_v29 = vpop.f32.mrb[14].mxu1 }
 0x20b   :  { %537 = vst [vmem:[#allocation3 + $0x70] sm:$0xff] %v521_v26  ;;  %v522_v30 = vmax.f32 %v675_v29, 0.0  ;;  %v444_v31 = vpop.f32.mrb[15].mxu1 }
 0x20c   :  { %535 = vst [vmem:[#allocation3 + $0x60] sm:$0xff] %v519_v28  ;;  %v520_v32 = vmax.f32 %v444_v31, 0.0 }
 0x20d   :  { %538 = vst [vmem:[#allocation3 + $0x78] sm:$0xff] %v522_v30 }
 0x20e   :  { %536 = vst [vmem:[#allocation3 + $0x68] sm:$0xff] %v520_v32 }
 0x20f   :  { %714 = shalt.err (!%p711_p4)
}
 0x210   :  { %s715_s14 = scalar_lea.hbm %s846_s4, 2048 }
 0x211   :  { %p716_p5 = scmp.ne.s32.totalorder %s846_s4, %s715_s14  ;;  %p719_p6 = scmp.lt.u32.totalorder %s715_s14, %s846_s4 }
 0x213   :  { %p721_p7 = pnand %p719_p6, %p716_p5 }
 0x215   :  { %724 = shalt.err (!%p721_p7)
}
 0x216   :  { %s728_s18 = smov 128   ;;  %s729_s19 = smov 8  }
 0x217   :  { %550 = dma.vmem_to_hbm [thread:$0]  %s545_s10, 2048, %s846_s4, [#allocation4], %s728_s18, %s728_s18, %s729_s19  }
 0x218   :  { %725 = dma.done.wait [#allocation4], 2048  }
 0x219   :  { %726 = vsyncadd [#allocation4], 4294965248 }
 0x21a   :  { %554 = vsyncpa [#allocation4], 1 }

</bundles_post_ra>
